<compile_context>
chip_gen: v7x
topology: tpu7x:2x2x1
jax: 0.10.0
libtpu: 0.0.40
codegen_flags: <defaults>
</compile_context>

<pallas_src>
import functools

import jax
import jax.numpy as jnp
from jax.experimental import pallas as pl
from jax.experimental.pallas import tpu as pltpu


def _round_up(n, m):
    return ((n + m - 1) // m) * m


def _default_compute_dtype():
    """bf16 activations on TPU generations with bf16 VPU/EUP (v6e, v7x, ...)."""
    try:
        kind = jax.devices()[0].device_kind.lower()
    except Exception:
        return jnp.float32
    if any(tag in kind for tag in ("v6", "v7", "v8")):
        return jnp.bfloat16
    return jnp.float32


def _mlp_kernel(xT_ref, w1_ref, b1_ref, w2_ref, b2_ref, w3_ref, b3_ref, oT_ref,
                *, lane_chunk, compute_dtype):
    """One batch tile: xT [2, TB] -> oT [1, TB] (batch on the 128-lane axis)."""
    cdt = compute_dtype
    f32_compute = jnp.dtype(cdt) == jnp.dtype(jnp.float32)
    dot_precision = (jax.lax.Precision.HIGHEST if f32_compute
                     else jax.lax.Precision.DEFAULT)

    # Weights/biases are tiny and VMEM-resident; load (and cast) once per step.
    w1 = w1_ref[...]                    # [16, 2]  f32
    b1 = b1_ref[...]                    # [16, 1]  f32
    w2 = w2_ref[...].astype(cdt)        # [16, 16] compute dtype (MXU operand)
    b2 = b2_ref[...]                    # [16, 1]  f32
    w3 = w3_ref[...]                    # [16, 1]  f32
    b3 = b3_ref[...]                    # [1, 1]   f32

    tb = xT_ref.shape[1]
    num_chunks = tb // lane_chunk       # static; lane_chunk divides tb

    def body(c, carry):
        # Sub-chunk over the lane (batch) axis so every intermediate
        # ([16, lane_chunk]) fits in vregs instead of spilling through VMEM.
        j = pl.multiple_of(c * lane_chunk, lane_chunk)
        xc = xT_ref[:, pl.ds(j, lane_chunk)]            # [2, LB] f32
        x0 = xc[0:1, :]
        x1 = xc[1:2, :]

        # layer_1 + tanh: K=2 -> two VPU broadcast-FMAs (f32), tanh in cdt (EUP).
        z1 = w1[:, 0:1] * x0 + w1[:, 1:2] * x1 + b1     # [16, LB] f32
        h1 = jnp.tanh(z1.astype(cdt))                   # [16, LB] cdt

        # layer_2 + tanh: 16x16 contraction on the MXU, f32 accumulation.
        z2 = jnp.dot(w2, h1, preferred_element_type=jnp.float32,
                     precision=dot_precision) + b2      # [16, LB] f32
        h2 = jnp.tanh(z2.astype(cdt)).astype(jnp.float32)   # [16, LB] f32

        # layer_3 (no activation): N=1 -> VPU multiply + sublane reduction.
        out = jnp.sum(w3 * h2, axis=0, keepdims=True) + b3  # [1, LB] f32
        oT_ref[:, pl.ds(j, lane_chunk)] = out.astype(oT_ref.dtype)
        return carry

    jax.lax.fori_loop(0, num_chunks, body, 0, unroll=min(num_chunks, 4))


@functools.partial(jax.jit, static_argnames=("block_b", "compute_dtype"))
def moon_model_v0_T(xT, w1, b1, w2, b2, w3, b3, *, block_b=32768,
                    compute_dtype=None):
    """Fast path: feature-major input xT [2, B] float32 -> output [1, B] float32.

    No wrapper transpose; padding only when B % 128 != 0.
    """
    if compute_dtype is None:
        compute_dtype = _default_compute_dtype()
    compute_dtype = jnp.dtype(compute_dtype)

    _, B = xT.shape
    B128 = _round_up(B, 128)
    if B128 != B:                      # skip the pad copy in the aligned case
        xT = jnp.pad(xT, ((0, 0), (0, B128 - B)))

    block_b = max(128, _round_up(block_b, 128))
    # Cap the batch tile at ~ceil(B/2) so there are always >= 2 grid steps
    # (keeps both v7x TensorCores busy); never exceeds the padded array.
    TB = min(block_b, max(128, _round_up(pl.cdiv(B, 2), 128)))
    lane_chunk = 1024
    while TB % lane_chunk:
        lane_chunk //= 2               # 1024 -> 512 -> 256 -> 128 (always divides)

    n_blocks = pl.cdiv(B128, TB)       # ragged last block handled by Pallas

    const = lambda arr: pl.BlockSpec(arr.shape, lambda i: (0, 0))
    cost = pl.CostEstimate(
        flops=640 * B128,              # ~(2*2 + 2*16 + 2)*16 MACs + bias adds / row
        transcendentals=32 * B128,     # 32 tanh per row
        bytes_accessed=12 * B128,      # 8 B in + 4 B out per row
    )

    kernel = functools.partial(_mlp_kernel, lane_chunk=lane_chunk,
                               compute_dtype=compute_dtype)

    oT = pl.pallas_call(
        kernel,
        out_shape=jax.ShapeDtypeStruct((1, B128), jnp.float32),
        grid=(n_blocks,),
        in_specs=[
            pl.BlockSpec((2, TB), lambda i: (0, i)),   # x tile (pipelined DMA)
            const(w1), const(b1),                      # weights: VMEM-resident
            const(w2), const(b2),
            const(w3), const(b3),
        ],
        out_specs=pl.BlockSpec((1, TB), lambda i: (0, i)),
        compiler_params=pltpu.CompilerParams(
            dimension_semantics=("parallel",),          # both TCs on v7x
        ),
        cost_estimate=cost,
    )(xT, w1, b1, w2, b2, w3, b3)

    return oT[:, :B]


@functools.partial(jax.jit, static_argnames=("block_b", "compute_dtype"))
def moon_model_v0(x, w1, b1, w2, b2, w3, b3, *, block_b=32768, compute_dtype=None):
    """PyTorch-layout wrapper: x [B, 2] float32 -> [B, 1] float32."""
    B = x.shape[0]
    oT = moon_model_v0_T(x.T, w1, b1, w2, b2, w3, b3,
                         block_b=block_b, compute_dtype=compute_dtype)
    # [1, B] and [B, 1] share the same row-major layout -> free reshape.
    return oT.reshape(B, 1)


def init_params(key):
    """Deterministic parameter init (uniform, PyTorch-Linear-style bounds).

    Weight layout is PyTorch's [out_features, in_features]; biases are stored
    as columns [out_features, 1]; w3 is stored transposed ([16, 1]).
    """
    ks = jax.random.split(key, 6)

    def linear(kw, kb, fan_in, fan_out):
        bound = 1.0 / jnp.sqrt(fan_in)
        w = jax.random.uniform(kw, (fan_out, fan_in), jnp.float32, -bound, bound)
        b = jax.random.uniform(kb, (fan_out, 1), jnp.float32, -bound, bound)
        return w, b

    w1, b1 = linear(ks[0], ks[1], 2, 16)
    w2, b2 = linear(ks[2], ks[3], 16, 16)
    w3, b3 = linear(ks[4], ks[5], 16, 1)
    w3 = w3.T                                    # store as [16, 1]
    return w1, b1, w2, b2, w3, b3


def _reference(x, w1, b1, w2, b2, w3, b3):
    hi = jax.lax.Precision.HIGHEST
    h = jnp.tanh(jnp.dot(x, w1.T, precision=hi) + b1.T)
    h = jnp.tanh(jnp.dot(h, w2.T, precision=hi) + b2.T)
    return jnp.dot(h, w3, precision=hi) + b3     # w3 already [16, 1]; b3 [1, 1]


if __name__ == "__main__":
    key = jax.random.PRNGKey(0)
    k_x1, k_x2, k_x3, k_p = jax.random.split(key, 4)
    params = init_params(k_p)

    auto_dt = _default_compute_dtype()
    auto_tol = (dict(atol=1e-4, rtol=1e-4) if auto_dt == jnp.float32
                else dict(atol=1e-1, rtol=1e-1))     # bf16 activations on v6e/v7x

    # 1) Small batch, batch-major (PyTorch) layout, forced f32 compute: strict check.
    B = 8
    x = jax.random.normal(k_x1, (B, 2), jnp.float32)
    out = jax.block_until_ready(moon_model_v0(x, *params, compute_dtype=jnp.float32))
    ref = _reference(x, *params)
    assert out.shape == (B, 1)
    assert jnp.allclose(out, ref, atol=1e-4, rtol=1e-4), \
        float(jnp.max(jnp.abs(out - ref)))

    # 2) Ragged batch (pad path) + multi-block grid, feature-major fast path,
    #    generation-default compute dtype.
    B2 = 300
    xT2 = jax.random.normal(k_x2, (2, B2), jnp.float32)
    oT2 = jax.block_until_ready(moon_model_v0_T(xT2, *params, block_b=128))
    ref2 = _reference(xT2.T, *params)
    assert oT2.shape == (1, B2)
    assert jnp.allclose(oT2[0], ref2[:, 0], **auto_tol), \
        float(jnp.max(jnp.abs(oT2[0] - ref2[:, 0])))

    # 3) Aligned batch (no pad copy), default tiling: >=2 grid blocks and a
    #    multi-chunk inner loop.
    B3 = 4096
    x3 = jax.random.normal(k_x3, (B3, 2), jnp.float32)
    out3 = jax.block_until_ready(moon_model_v0(x3, *params))
    ref3 = _reference(x3, *params)
    assert out3.shape == (B3, 1)
    assert jnp.allclose(out3, ref3, **auto_tol), \
        float(jnp.max(jnp.abs(out3 - ref3)))

    print("KERNEL_OK")
</pallas_src>

<mosaic_0001>
module attributes {stable_mosaic.version = 11 : i64} {
  func.func @_mlp_kernel(%arg0: i32, %arg1: memref<2x128xf32, #tpu.memory_space<vmem>>, %arg2: memref<16x2xf32, #tpu.memory_space<vmem>>, %arg3: memref<16x1xf32, #tpu.memory_space<vmem>>, %arg4: memref<16x16xf32, #tpu.memory_space<vmem>>, %arg5: memref<16x1xf32, #tpu.memory_space<vmem>>, %arg6: memref<16x1xf32, #tpu.memory_space<vmem>>, %arg7: memref<1x1xf32, #tpu.memory_space<vmem>>, %arg8: memref<1x128xf32, #tpu.memory_space<vmem>>) attributes {dimension_semantics = [#tpu.dimension_semantics<parallel>], iteration_bounds = array<i64: 1>, scalar_prefetch = 0 : i64, scratch_operands = 0 : i64, tpu.core_type = #tpu.core_type<tc>, window_params = [{transform_indices = @transform_0, window_bounds = array<i64: 2, 128>}, {pipeline_mode = #tpu.pipeline_mode<synchronous>, transform_indices = @transform_1, window_bounds = array<i64: 16, 2>}, {pipeline_mode = #tpu.pipeline_mode<synchronous>, transform_indices = @transform_2, window_bounds = array<i64: 16, 1>}, {pipeline_mode = #tpu.pipeline_mode<synchronous>, transform_indices = @transform_3, window_bounds = array<i64: 16, 16>}, {pipeline_mode = #tpu.pipeline_mode<synchronous>, transform_indices = @transform_4, window_bounds = array<i64: 16, 1>}, {pipeline_mode = #tpu.pipeline_mode<synchronous>, transform_indices = @transform_5, window_bounds = array<i64: 16, 1>}, {pipeline_mode = #tpu.pipeline_mode<synchronous>, transform_indices = @transform_6, window_bounds = array<i64: 1, 1>}, {transform_indices = @transform_7, window_bounds = array<i64: 1, 128>}]} {
    %c0 = arith.constant 0 : index
    %c0_0 = arith.constant 0 : index
    %0 = vector.load %arg2[%c0, %c0_0] : memref<16x2xf32, #tpu.memory_space<vmem>>, vector<16x2xf32>
    %c0_1 = arith.constant 0 : index
    %c0_2 = arith.constant 0 : index
    %1 = vector.load %arg3[%c0_1, %c0_2] : memref<16x1xf32, #tpu.memory_space<vmem>>, vector<16x1xf32>
    %c0_3 = arith.constant 0 : index
    %c0_4 = arith.constant 0 : index
    %2 = vector.load %arg4[%c0_3, %c0_4] : memref<16x16xf32, #tpu.memory_space<vmem>>, vector<16x16xf32>
    %c0_5 = arith.constant 0 : index
    %c0_6 = arith.constant 0 : index
    %3 = vector.load %arg5[%c0_5, %c0_6] : memref<16x1xf32, #tpu.memory_space<vmem>>, vector<16x1xf32>
    %c0_7 = arith.constant 0 : index
    %c0_8 = arith.constant 0 : index
    %4 = vector.load %arg6[%c0_7, %c0_8] : memref<16x1xf32, #tpu.memory_space<vmem>>, vector<16x1xf32>
    %c0_9 = arith.constant 0 : index
    %c0_10 = arith.constant 0 : index
    %5 = vector.load %arg7[%c0_9, %c0_10] : memref<1x1xf32, #tpu.memory_space<vmem>>, vector<1x1xf32>
    %c0_i32 = arith.constant 0 : i32
    %c128_i32 = arith.constant 128 : i32
    %6 = arith.muli %c0_i32, %c128_i32 : i32
    %7 = tpu.assume_multiple %6, 128 : i32
    %c0_11 = arith.constant 0 : index
    %8 = arith.index_cast %7 : i32 to index
    %9 = vector.load %arg1[%c0_11, %8] : memref<2x128xf32, #tpu.memory_space<vmem>>, vector<2x128xf32>
    %10 = vector.extract_strided_slice %9 {offsets = [0, 0], sizes = [1, 128], strides = [1, 1]} : vector<2x128xf32> to vector<1x128xf32>
    %11 = vector.extract_strided_slice %9 {offsets = [1, 0], sizes = [1, 128], strides = [1, 1]} : vector<2x128xf32> to vector<1x128xf32>
    %12 = vector.extract_strided_slice %0 {offsets = [0, 0], sizes = [16, 1], strides = [1, 1]} : vector<16x2xf32> to vector<16x1xf32>
    %13 = vector.broadcast %12 : vector<16x1xf32> to vector<16x128xf32>
    %14 = vector.broadcast %10 : vector<1x128xf32> to vector<16x128xf32>
    %15 = arith.mulf %13, %14 : vector<16x128xf32>
    %16 = vector.extract_strided_slice %0 {offsets = [0, 1], sizes = [16, 1], strides = [1, 1]} : vector<16x2xf32> to vector<16x1xf32>
    %17 = vector.broadcast %16 : vector<16x1xf32> to vector<16x128xf32>
    %18 = vector.broadcast %11 : vector<1x128xf32> to vector<16x128xf32>
    %19 = arith.mulf %17, %18 : vector<16x128xf32>
    %20 = arith.addf %15, %19 : vector<16x128xf32>
    %21 = vector.broadcast %1 : vector<16x1xf32> to vector<16x128xf32>
    %22 = arith.addf %20, %21 : vector<16x128xf32>
    %23 = math.tanh %22 : vector<16x128xf32>
    %cst = arith.constant dense<0.000000e+00> : vector<16x128xf32>
    %24 = tpu.matmul %2, %23, %cst {dimension_numbers = #tpu.dot_dimension_numbers<[1], [0], [0], [1], [0, 0, 1, 1], [], []>, precision = #tpu.contract_precision<fp32>} : vector<16x16xf32>, vector<16x128xf32>, vector<16x128xf32> -> vector<16x128xf32>
    %25 = vector.broadcast %3 : vector<16x1xf32> to vector<16x128xf32>
    %26 = arith.addf %24, %25 : vector<16x128xf32>
    %27 = math.tanh %26 : vector<16x128xf32>
    %28 = vector.broadcast %4 : vector<16x1xf32> to vector<16x128xf32>
    %29 = arith.mulf %28, %27 : vector<16x128xf32>
    %cst_12 = arith.constant dense<0.000000e+00> : vector<128xf32>
    %30 = vector.multi_reduction <add>, %29, %cst_12 [0] : vector<16x128xf32> to vector<128xf32>
    %31 = vector.shape_cast %30 : vector<128xf32> to vector<1x128xf32>
    %32 = vector.broadcast %5 : vector<1x1xf32> to vector<1x128xf32>
    %33 = arith.addf %31, %32 : vector<1x128xf32>
    %c0_13 = arith.constant 0 : index
    %34 = arith.index_cast %7 : i32 to index
    %35 = vector.load %arg8[%c0_13, %34] : memref<1x128xf32, #tpu.memory_space<vmem>>, vector<1x128xf32>
    tpu.vector_store %arg8[%c0_13, %34], %33 {strides = array<i32>} : memref<1x128xf32, #tpu.memory_space<vmem>>, vector<1x128xf32>,
    %c1_i32 = arith.constant 1 : i32
    return
  }
  func.func @transform_0(%arg0: i32) -> (i32, i32) {
    %c0_i32 = arith.constant 0 : i32
    %c0_i32_0 = arith.constant 0 : i32
    return %c0_i32, %arg0 : i32, i32
  }
  func.func @transform_1(%arg0: i32) -> (i32, i32) {
    %c0_i32 = arith.constant 0 : i32
    %c0_i32_0 = arith.constant 0 : i32
    %c0_i32_1 = arith.constant 0 : i32
    return %c0_i32, %c0_i32_0 : i32, i32
  }
  func.func @transform_2(%arg0: i32) -> (i32, i32) {
    %c0_i32 = arith.constant 0 : i32
    %c0_i32_0 = arith.constant 0 : i32
    %c0_i32_1 = arith.constant 0 : i32
    return %c0_i32, %c0_i32_0 : i32, i32
  }
  func.func @transform_3(%arg0: i32) -> (i32, i32) {
    %c0_i32 = arith.constant 0 : i32
    %c0_i32_0 = arith.constant 0 : i32
    %c0_i32_1 = arith.constant 0 : i32
    return %c0_i32, %c0_i32_0 : i32, i32
  }
  func.func @transform_4(%arg0: i32) -> (i32, i32) {
    %c0_i32 = arith.constant 0 : i32
    %c0_i32_0 = arith.constant 0 : i32
    %c0_i32_1 = arith.constant 0 : i32
    return %c0_i32, %c0_i32_0 : i32, i32
  }
  func.func @transform_5(%arg0: i32) -> (i32, i32) {
    %c0_i32 = arith.constant 0 : i32
    %c0_i32_0 = arith.constant 0 : i32
    %c0_i32_1 = arith.constant 0 : i32
    return %c0_i32, %c0_i32_0 : i32, i32
  }
  func.func @transform_6(%arg0: i32) -> (i32, i32) {
    %c0_i32 = arith.constant 0 : i32
    %c0_i32_0 = arith.constant 0 : i32
    %c0_i32_1 = arith.constant 0 : i32
    return %c0_i32, %c0_i32_0 : i32, i32
  }
  func.func @transform_7(%arg0: i32) -> (i32, i32) {
    %c0_i32 = arith.constant 0 : i32
    %c0_i32_0 = arith.constant 0 : i32
    return %c0_i32, %arg0 : i32, i32
  }
}

</mosaic_0001>

<bundles_post_ra>
// kernel: moon_model_v0_T.1
= control target key start
LH: loop header
LB: loop body
LE: loop exit
PB: predicated region body
PF: predicated region fallthrough
CT: control target
= control target key end

     0   :  { %s904_s0 = inlined_call_operand.vmem [shape: f32[2,128], index: 0, kind: input, shape index: {}]   ;;  %s905_s1 = inlined_call_operand.vmem [shape: f32[16,2], index: 1, kind: input, shape index: {}]   ;;  %s906_s2 = inlined_call_operand.vmem [shape: f32[16,1], index: 2, kind: input, shape index: {}]   ;;  %s907_s3 = inlined_call_operand.vmem [shape: f32[16,16], index: 3, kind: input, shape index: {}]   ;;  %s908_s4 = inlined_call_operand.vmem [shape: f32[16,1], index: 4, kind: input, shape index: {}]   ;;  %s909_s5 = inlined_call_operand.vmem [shape: f32[16,1], index: 5, kind: input, shape index: {}]   ;;  %s910_s6 = inlined_call_operand.<no memory space> [shape: f32[1,1], index: 6, kind: input, shape index: {}]   ;;  %s911_s7 = inlined_call_operand.hbm [shape: f32[1,128], index: 7, kind: output, shape index: {}]  }
   0x1   :  { %v12_v0 = vstv %s910_s6 }
   0x2   :  { %13 = vst [vmem:[#allocation2] sm:$0x1] %v12_v0 }
   0x3   :  { %v29_v1 = vld [vmem:[%s905_s1] sm:$0xff]  ;;  %v792_v2 = vmov 1   ;;  %v793_v3 = vmov 0   ;;  %v30_v4 = vld [vmem:[%s905_s1 + $0x8] sm:$0xff] }
   0x4   :  { %758 = vset.pattern.permute.xlu1 %v792_v2  ;;  %757 = vset.pattern.permute.xlu0 %v793_v3 }
   0x5   :  { %58 = vperm.xlu1 %758, %v29_v1   ;;  %43 = vperm.xlu0 %757, %v29_v1  }
   0x6   :  { %14 = vsyncpa [#allocation4], 0  ;;  %v31_v5 = vld [vmem:[%s906_s2] sm:$0xff]  ;;  %v32_v6 = vld [vmem:[%s906_s2 + $0x8] sm:$0xff]  ;;  %vm97_vm0 = vcmask 130048   ;;  %v51_v19 = vlaneseq }
   0x7   :  { %v35_v7 = vld [vmem:[%s908_s4] sm:$0xff]  ;;  %v36_v8 = vld [vmem:[%s908_s4 + $0x8] sm:$0xff] }
   0x8   :  { %v37_v9 = vld [vmem:[%s909_s5] sm:$0xff]  ;;  %v38_v10 = vld [vmem:[%s909_s5 + $0x8] sm:$0xff]  ;;  %v873_v20 = vshrl.u32 %v51_v19, 7 }
   0x9   :  { %62 = vperm.xlu1 %758, %v30_v4   ;;  %48 = vperm.xlu0 %757, %v30_v4   ;;  %v39_v11 = vld [vmem:[#allocation2] sm:$0x1]  ;;  %v34_v34 = vld [vmem:[%s907_s3 + $0x8] sm:$0xff] }
   0xa   :  { %v33_v12 = vld [vmem:[%s907_s3] sm:$0xff]  ;;  %v67_v21 = vsub.s32 1, %v873_v20  ;;  %v53_v22 = vsub.s32 0, %v873_v20  ;;  %v102_v38 = vsel %vm97_vm0, %v34_v34, 0 }
   0xb   :  { %v99_v13 = vsel %vm97_vm0, %v33_v12, 0  ;;  %v40_v23 = vld [vmem:[%s904_s0] sm:$0x3]  ;;  %v181_v42 = vand.u32 4294901760, %v102_v38  ;;  %s794_s0 = smov [#allocation3]  }
   0xc   :  { %v866_v14 = vand.u32 4294901760, %v99_v13  ;;  %v68_v24 = vrot.slane %v40_v23, %v67_v21  ;;  %v54_v25 = vrot.slane %v40_v23, %v53_v22  ;;  %s644_s3 = sshll.u32 %s794_s0, 4  ;;  %s645_s3 = int_to_ptr.vmem [resolvable:$true] %s644_s3 }
   0xd   :  { %759 = vset.pattern.permute.xlu1 %v793_v3  ;;  %75 = vperm.xlu0 %757, %v31_v5   ;;  %v182_v43 = vsub.f32 %v102_v38, %v181_v42  ;;  %s768_s20 = scalar_lea.vmem %s645_s3, 16  ;;  %s772_s21 = scalar_lea.vmem %s645_s3, 32 }
   0xe   :  { %80 = vperm.xlu1 %759, %v32_v6   ;;  %v869_v15 = vsub.f32 %v99_v13, %v866_v14  ;;  %p769_p0 = scmp.ne.s32.totalorder %s645_s3, %s768_s20  ;;  %p773_p1 = scmp.lt.s32.totalorder %s645_s3, %s645_s3 }
   0xf   :  { %v183_v44 = vand.u32 4294901760, %v182_v43  ;;  %p774_p2 = scmp.lt.s32.totalorder %s772_s21, %s768_s20 }
  0x10   :  { %v173_v16 = vand.u32 4294901760, %v869_v15 }
  0x11   :  { %89 = vperm.xlu0 %757, %v35_v7   ;;  %v184_v49 = vsub.f32 %v182_v43, %v183_v44  ;;  %p775_p3 = por %p774_p2, %p773_p1 }
  0x12   :  { %94 = vperm.xlu1 %759, %v36_v8   ;;  %v174_v17 = vsub.f32 %v869_v15, %v173_v16  ;;  %701 = vmatprep.mubr.f32.mxu0 %v173_v16 }
  0x13   :  { %v185_v54 = vand.u32 4294901760, %v184_v49  ;;  %p776_p4 = pnand %p775_p3, %p769_p0 }
  0x14   :  { %v175_v18 = vand.u32 4294901760, %v174_v17 }
  0x15   :  { %610 = vperm.xlu0 %757, %v37_v9  }
  0x16   :  { %615 = vperm.xlu1 %759, %v38_v10   ;;  %680 = vmatprep.mubr.f32.mxu1 %v175_v18 }
  0x19   :  { %629 = vperm.xlu0 %757, %v39_v11  }
  0x84   :  { %v59_v26 = vpop.permute.xlu1 %58  ;;  %v44_v27 = vpop.permute.xlu0 %43 }
  0x85   :  { %v69_v28 = vmul.f32 %v68_v24, %v59_v26  ;;  %v55_v29 = vmul.f32 %v54_v25, %v44_v27 }
  0x87   :  { %v71_v35 = vadd.f32 %v69_v28, %v55_v29 }
  0x88   :  { %v63_v30 = vpop.permute.xlu1 %62  ;;  %v49_v31 = vpop.permute.xlu0 %48 }
  0x89   :  { %v70_v32 = vmul.f32 %v68_v24, %v63_v30  ;;  %v56_v33 = vmul.f32 %v54_v25, %v49_v31 }
  0x8b   :  { %v72_v36 = vadd.f32 %v70_v32, %v56_v33 }
  0x8c   :  { %v76_v37 = vpop.permute.xlu0 %75 }
  0x8d   :  { %v83_v39 = vadd.f32 %v76_v37, %v71_v35  ;;  %v81_v40 = vpop.permute.xlu1 %80 }
  0x8e   :  { %v84_v41 = vadd.f32 %v81_v40, %v72_v36 }
  0x8f   :  { %760 = vtanh.f32 %v83_v39 }
  0x90   :  { %762 = vtanh.f32 %v84_v41  ;;  %v90_v63 = vpop.permute.xlu0 %89 }
  0x91   :  { %v95_v0 = vpop.permute.xlu1 %94 }
  0x94   :  { %v611_v12 = vpop.permute.xlu0 %610 }
  0x95   :  { %v616_v10 = vpop.permute.xlu1 %615 }
  0x98   :  { %v630_v21 = vpop.permute.xlu0 %629 }
  0x99   :  { %v761_v45 = vpop.eup %760  ;;  %v635_v24 = vrot.slane %v630_v21, %v53_v22 }
  0x9a   :  { %v763_v46 = vpop.eup %762  ;;  %v105_v47 = vand.u32 4294901760, %v761_v45 }
  0x9b   :  { %v108_v48 = vand.u32 4294901760, %v763_v46 }
  0x9c   :  { %v193_v50 = vsub.f32 %v761_v45, %v105_v47 }
  0x9d   :  { %v718_v51 = vpack.c.bf16 %v108_v48, %v105_v47  ;;  %v200_v52 = vsub.f32 %v763_v46, %v108_v48 }
  0x9e   :  { %v194_v53 = vand.u32 4294901760, %v193_v50 }
  0x9f   :  { %719 = vmatprep.subr.bf16.mxu1 %v718_v51  ;;  %731 = vmatprep.subr.bf16.mxu0 %v718_v51  ;;  %v201_v55 = vand.u32 4294901760, %v200_v52  ;;  %v726_v62 = vpack.c.bf16 %v200_v52, %v193_v50 }
  0xa0   :  { %721 = vmatpush3.bf16.msra.mxu1 %v718_v51  ;;  %733 = vmatpush3.bf16.msra.mxu0 %v718_v51  ;;  %v195_v56 = vsub.f32 %v193_v50, %v194_v53 }
  0xa1   :  { %v734_v57 = vpack.c.bf16 %v201_v55, %v194_v53  ;;  %v202_v58 = vsub.f32 %v200_v52, %v201_v55 }
  0xa2   :  { %v196_v59 = vand.u32 4294901760, %v195_v56 }
  0xa3   :  { %681 = vmatmul.mubr.f32.vlgmr.msra.gmra.mrb[0].mxu1 %v185_v54  ;;  %702 = vmatmul.mubr.f32.vlgmr.msra.gmra.mrb[0].mxu0 %v183_v44  ;;  %v203_v60 = vand.u32 4294901760, %v202_v58 }
  0xa4   :  { %735 = vmatprep.subr.bf16.mxu0 %v734_v57  ;;  %687 = vmatprep.mubr.f32.mxu1 %v866_v14 }
  0xa5   :  { %737 = vmatpush3.bf16.msra.mxu0 %v734_v57  ;;  %v722_v61 = vpack.c.bf16 %v203_v60, %v196_v59  ;;  %708 = vmatprep.mubr.f32.mxu0 %v866_v14 }
  0xa6   :  { %739 = vmatprep.subr.bf16.mxu0 %v718_v51 }
  0xa7   :  { %723 = vmatprep.subr.bf16.mxu1 %v722_v61 }
  0xa8   :  { %725 = vmatpush3.bf16.msra.mxu1 %v722_v61 }
  0xa9   :  { %727 = vmatprep.subr.bf16.mxu1 %v726_v62 }
  0xab   :  { %688 = vmatmul.mubr.f32.vlgmr.msra.gmra.mrb[0].mxu1 %v181_v42  ;;  %709 = vmatmul.mubr.f32.vlgmr.msra.gmra.mrb[0].mxu0 %v181_v42 }
  0xac   :  { %741 = vmatpush3.bf16.msra.mxu0 %v718_v51  ;;  %729 = vmatpush3.bf16.msra.mxu1 %v726_v62 }
  0xad   :  { %694 = vmatprep.mubr.f32.mxu1 %v869_v15  ;;  %715 = vmatprep.mubr.f32.mxu0 %v866_v14 }
  0xb3   :  { %695 = vmatmul.mubr.f32.vlgmr.msra.gmra.mrb[0].mxu1 %v182_v43  ;;  %716 = vmatmul.mubr.f32.vlgmr.msra.gmra.mrb[0].mxu0 %v181_v42 }
 0x186   :  { %v696_v1 = vpop.f32.mrb[0].mxu1  ;;  %v717_v2 = vpop.f32.mrb[0].mxu0 }
 0x187   :  { %v742_v3 = vadd.f32 %v696_v1, %v95_v0  ;;  %v350_v4 = vpop.f32.mrb[1].mxu1  ;;  %v596_v5 = vpop.f32.mrb[1].mxu0 }
 0x188   :  { %v744_v6 = vadd.f32 %v350_v4, %v90_v63 }
 0x189   :  { %v743_v7 = vadd.f32 %v742_v3, %v717_v2 }
 0x18a   :  { %v745_v8 = vadd.f32 %v744_v6, %v596_v5 }
 0x18b   :  { %764 = vtanh.f32 %v743_v7 }
 0x18c   :  { %766 = vtanh.f32 %v745_v8 }
 0x195   :  { %v765_v9 = vpop.eup %764 }
 0x196   :  { %v767_v11 = vpop.eup %766  ;;  %v619_v13 = vmul.f32 %v765_v9, %v616_v10 }
 0x197   :  { %v618_v14 = vmul.f32 %v767_v11, %v611_v12 }
 0x199   :  { %v620_v15 = vadd.f32 %v619_v13, %v618_v14 }
 0x19b   :  { %v621_v16 = vrot.slane %v620_v15, 4 }
 0x19d   :  { %v622_v17 = vadd.f32 %v621_v16, %v620_v15 }
 0x19f   :  { %v623_v18 = vrot.slane %v622_v17, 2 }
 0x1a1   :  { %v624_v19 = vadd.f32 %v623_v18, %v622_v17 }
 0x1a3   :  { %v625_v23 = vrot.slane %v624_v19, 1 }
 0x1a5   :  { %v626_v25 = vadd.f32 %v625_v23, %v624_v19 }
 0x1a7   :  { %v636_v26 = vadd.f32 %v635_v24, %v626_v25 }
 0x1a9   :  { %637 = vst [vmem:[#allocation3] sm:$0x1] %v636_v26 }
 0x1aa   :  { %779 = shalt.err (!%p776_p4)
}
 0x1ab   :  { %s780_s24 = scalar_lea.hbm %s911_s7, 16 }
 0x1ac   :  { %p781_p5 = scmp.ne.s32.totalorder %s911_s7, %s780_s24  ;;  %p784_p6 = scmp.lt.u32.totalorder %s780_s24, %s911_s7 }
 0x1ae   :  { %p786_p7 = pnand %p784_p6, %p781_p5 }
 0x1b0   :  { %789 = shalt.err (!%p786_p7)
}
 0x1b1   :  { %647 = dma.vmem_to_hbm [thread:$0]  %s645_s3, 16, %s911_s7, [#allocation4]  }
 0x1b2   :  { %790 = dma.done.wait [#allocation4], 16  }
 0x1b3   :  { %791 = vsyncadd [#allocation4], 4294967280 }
 0x1b4   :  { %651 = vsyncpa [#allocation4], 1 }

</bundles_post_ra>
